<compile_context>
chip_gen: v7x
topology: tpu7x:2x2x1
jax: 0.10.0
libtpu: 0.0.40
codegen_flags: <defaults>
</compile_context>

<pallas_src>
import functools

import jax
import jax.numpy as jnp
from jax.experimental import pallas as pl
from jax.experimental.pallas import tpu as pltpu


def _round_up(x, m):
    return ((x + m - 1) // m) * m


def _inference_kernel(x_ref, w_ref, b_ref, t_ref, m_ref,
                      logits_ref, part_ref, *, n_tokens):
    # x: (TM, D) bf16/f32, w: (D, Cp) bf16/f32, b: (1, Cp) f32
    # t, m: (TM, 1) int32
    # logits: (TM, Cp) f32, part: (1, 8, 128) f32 per-tile partial loss sum
    i = pl.program_id(0)
    tm = x_ref.shape[0]

    # Linear projection: MXU matmul with f32 accumulation, f32 bias add.
    logits = jnp.dot(x_ref[...], w_ref[...],
                     preferred_element_type=jnp.float32) + b_ref[...]
    logits_ref[...] = logits.astype(logits_ref.dtype)

    # Row validity for the (possibly padded) last tile + user mask.
    row = jax.lax.broadcasted_iota(jnp.int32, (tm, 1), 0) + i * tm
    keep = jnp.logical_and(row < n_tokens, m_ref[...] == 1)      # (TM, 1) bool

    # Masked token-level cross entropy, all f32 VPU/EUP math.
    mx = jnp.max(logits, axis=-1, keepdims=True)
    lse = mx + jnp.log(jnp.sum(jnp.exp(logits - mx), axis=-1, keepdims=True))
    class_ids = jax.lax.broadcasted_iota(jnp.int32, logits.shape, 1)
    tgt_logit = jnp.sum(jnp.where(class_ids == t_ref[...], logits, 0.0),
                        axis=-1, keepdims=True)
    # jnp.where (not multiply) so garbage padded rows cannot inject NaN.
    per_token = jnp.where(keep, lse - tgt_logit, 0.0)

    # Lane-dense (8,128) store of the broadcast partial sum for this tile.
    part_ref[...] = jnp.full(part_ref.shape, jnp.sum(per_token),
                             dtype=part_ref.dtype)


def inference_layer_forward(vectors, targets, mask, w, b, *,
                            block_tokens=256, matmul_dtype=jnp.bfloat16):
    """Equivalent of InferenceLayer(use_crf=False).forward.

    vectors: (B, S, D) float32
    targets: (B, S)    int32
    mask:    (B, S)    int32 (1 = keep, 0 = ignore)
    w:       (D, C)    float32   (transposed nn.Linear weight)
    b:       (C,)      float32
    returns: (loss scalar, logits (B, S, C) float32)
    """
    B, S, D = vectors.shape
    C = w.shape[1]
    N = B * S
    Cp = _round_up(C, 128)                         # lane-dense class dim
    tm = _round_up(min(block_tokens, N), 8)        # sublane-aligned token tile
    num_tiles = -(-N // tm)

    x = vectors.reshape(N, D).astype(matmul_dtype)
    # Zero-pad weight columns; bias pad columns get -1e30 so padded classes
    # never win the max and exp() underflows to exactly 0 in logsumexp.
    w_p = jnp.zeros((D, Cp), matmul_dtype).at[:, :C].set(w.astype(matmul_dtype))
    b_p = jnp.full((1, Cp), -1e30, jnp.float32).at[0, :C].set(
        b.astype(jnp.float32))
    t = targets.reshape(N, 1).astype(jnp.int32)
    m = mask.reshape(N, 1).astype(jnp.int32)

    kernel = functools.partial(_inference_kernel, n_tokens=N)

    bytes_accessed = (x.size * x.dtype.itemsize
                      + w_p.size * w_p.dtype.itemsize
                      + b_p.size * 4 + t.size * 4 + m.size * 4
                      + N * Cp * 4 + num_tiles * 8 * 128 * 4)
    cost = pl.CostEstimate(flops=2 * N * D * Cp,
                           transcendentals=N * Cp,
                           bytes_accessed=bytes_accessed)

    logits_p, partials = pl.pallas_call(
        kernel,
        out_shape=(
            jax.ShapeDtypeStruct((N, Cp), jnp.float32),
            jax.ShapeDtypeStruct((num_tiles, 8, 128), jnp.float32),
        ),
        grid_spec=pltpu.PrefetchScalarGridSpec(
            num_scalar_prefetch=0,
            grid=(num_tiles,),
            in_specs=[
                pl.BlockSpec((tm, D), lambda i: (i, 0)),        # x: streamed
                pl.BlockSpec((D, Cp), lambda i: (0, 0)),        # w: resident
                pl.BlockSpec((1, Cp), lambda i: (0, 0)),        # b: resident
                pl.BlockSpec((tm, 1), lambda i: (i, 0)),        # targets
                pl.BlockSpec((tm, 1), lambda i: (i, 0)),        # mask
            ],
            out_specs=[
                pl.BlockSpec((tm, Cp), lambda i: (i, 0)),       # padded logits
                pl.BlockSpec((1, 8, 128), lambda i: (i, 0, 0)),  # partial loss
            ],
        ),
        compiler_params=pltpu.CompilerParams(
            dimension_semantics=("parallel",)),
        cost_estimate=cost,
    )(x, w_p, b_p, t, m)

    loss_sum = jnp.sum(partials[:, 0, 0])
    count = jnp.sum((mask == 1).astype(jnp.float32))
    # NOTE: divides by zero (NaN) if mask is all zeros — same as the reference.
    loss = loss_sum / count
    logits = logits_p[:, :C].reshape(B, S, C)
    return loss, logits


def _reference(vectors, targets, mask, w, b, matmul_dtype=jnp.float32):
    # Pure-JAX reference mirroring fc_forward semantics.
    logits = (jnp.einsum("bsd,dc->bsc",
                         vectors.astype(matmul_dtype), w.astype(matmul_dtype),
                         preferred_element_type=jnp.float32)
              + b.astype(jnp.float32))
    lflat = logits.reshape(-1, logits.shape[-1])
    tflat = targets.reshape(-1)
    mflat = (mask.reshape(-1) == 1).astype(jnp.float32)
    lse = jax.nn.logsumexp(lflat, axis=-1)
    tgt = jnp.take_along_axis(lflat, tflat[:, None], axis=-1)[:, 0]
    per_tok = (lse - tgt) * mflat
    loss = jnp.sum(per_tok) / jnp.sum(mflat)
    return loss, logits


if __name__ == "__main__":
    # batch=2, seq=10, hidden=32, n_classes=8
    # N = 20 tokens with block_tokens=8 -> grid of 3 tiles (last tile padded),
    # exercising the streamed grid, resident weights and remainder masking.
    B, S, D, C = 2, 10, 32, 8

    key = jax.random.PRNGKey(0)
    kx, kt, km, kw, kb = jax.random.split(key, 5)

    vectors = jax.random.normal(kx, (B, S, D), dtype=jnp.float32)
    targets = jax.random.randint(kt, (B, S), 0, C, dtype=jnp.int32)
    # mask: mostly ones with a few zeros (padding positions)
    mask = (jax.random.uniform(km, (B, S)) > 0.2).astype(jnp.int32)

    # Deterministic nn.Linear-style init: U(-1/sqrt(D), 1/sqrt(D))
    bound = 1.0 / (D ** 0.5)
    w = jax.random.uniform(kw, (D, C), minval=-bound, maxval=bound,
                           dtype=jnp.float32)
    b = jax.random.uniform(kb, (C,), minval=-bound, maxval=bound,
                           dtype=jnp.float32)

    loss, logits = inference_layer_forward(vectors, targets, mask, w, b,
                                           block_tokens=8,
                                           matmul_dtype=jnp.bfloat16)
    jax.block_until_ready((loss, logits))

    # Tight check vs a reference using the same bf16 matmul inputs
    # (f32 accumulation on both sides).
    ref_loss_bf, ref_logits_bf = _reference(vectors, targets, mask, w, b,
                                            matmul_dtype=jnp.bfloat16)
    assert jnp.allclose(logits, ref_logits_bf, atol=1e-3, rtol=1e-3)
    assert jnp.allclose(loss, ref_loss_bf, atol=1e-3, rtol=1e-3)

    # Loose check vs the full-f32 reference (original module semantics),
    # within bf16 input-rounding error.
    ref_loss_f32, ref_logits_f32 = _reference(vectors, targets, mask, w, b,
                                              matmul_dtype=jnp.float32)
    assert jnp.allclose(logits, ref_logits_f32, atol=3e-2, rtol=3e-2)
    assert jnp.allclose(loss, ref_loss_f32, atol=3e-2, rtol=3e-2)

    print("KERNEL_OK")
</pallas_src>

<mosaic_0001>
module attributes {stable_mosaic.version = 11 : i64} {
  func.func @_inference_kernel(%arg0: i32, %arg1: memref<8x32xbf16, #tpu.memory_space<vmem>>, %arg2: memref<32x128xbf16, #tpu.memory_space<vmem>>, %arg3: memref<1x128xf32, #tpu.memory_space<vmem>>, %arg4: memref<8x1xi32, #tpu.memory_space<vmem>>, %arg5: memref<8x1xi32, #tpu.memory_space<vmem>>, %arg6: memref<8x128xf32, #tpu.memory_space<vmem>>, %arg7: memref<1x8x128xf32, #tpu.memory_space<vmem>>) attributes {dimension_semantics = [#tpu.dimension_semantics<parallel>], iteration_bounds = array<i64: 3>, scalar_prefetch = 0 : i64, scratch_operands = 0 : i64, tpu.core_type = #tpu.core_type<tc>, window_params = [{transform_indices = @transform_0, window_bounds = array<i64: 8, 32>}, {pipeline_mode = #tpu.pipeline_mode<synchronous>, transform_indices = @transform_1, window_bounds = array<i64: 32, 128>}, {pipeline_mode = #tpu.pipeline_mode<synchronous>, transform_indices = @transform_2, window_bounds = array<i64: 1, 128>}, {transform_indices = @transform_3, window_bounds = array<i64: 8, 1>}, {transform_indices = @transform_4, window_bounds = array<i64: 8, 1>}, {transform_indices = @transform_5, window_bounds = array<i64: 8, 128>}, {transform_indices = @transform_6, window_bounds = array<i64: 1, 8, 128>}]} {
    %c0 = arith.constant 0 : index
    %c0_0 = arith.constant 0 : index
    %0 = vector.load %arg1[%c0, %c0_0] : memref<8x32xbf16, #tpu.memory_space<vmem>>, vector<8x32xbf16>
    %c0_1 = arith.constant 0 : index
    %c0_2 = arith.constant 0 : index
    %1 = vector.load %arg2[%c0_1, %c0_2] : memref<32x128xbf16, #tpu.memory_space<vmem>>, vector<32x128xbf16>
    %cst = arith.constant dense<0.000000e+00> : vector<8x128xf32>
    %2 = tpu.matmul %0, %1, %cst {dimension_numbers = #tpu.dot_dimension_numbers<[1], [0], [0], [1], [0, 0, 1, 1], [], []>} : vector<8x32xbf16>, vector<32x128xbf16>, vector<8x128xf32> -> vector<8x128xf32>
    %c0_3 = arith.constant 0 : index
    %c0_4 = arith.constant 0 : index
    %3 = vector.load %arg3[%c0_3, %c0_4] : memref<1x128xf32, #tpu.memory_space<vmem>>, vector<1x128xf32>
    %4 = vector.broadcast %3 : vector<1x128xf32> to vector<8x128xf32>
    %5 = arith.addf %2, %4 : vector<8x128xf32>
    %c0_5 = arith.constant 0 : index
    %c0_6 = arith.constant 0 : index
    %6 = vector.load %arg6[%c0_5, %c0_6] : memref<8x128xf32, #tpu.memory_space<vmem>>, vector<8x128xf32>
    tpu.vector_store %arg6[%c0_5, %c0_6], %5 {strides = array<i32>} : memref<8x128xf32, #tpu.memory_space<vmem>>, vector<8x128xf32>,
    %7 = tpu.iota {dimensions = array<i32: 0>} : vector<8x1xi32>
    %c8_i32 = arith.constant 8 : i32
    %8 = arith.muli %arg0, %c8_i32 : i32
    %9 = vector.broadcast %8 : i32 to vector<8x1xi32>
    %10 = arith.addi %7, %9 : vector<8x1xi32>
    %c20_i32 = arith.constant 20 : i32
    %11 = vector.broadcast %c20_i32 : i32 to vector<8x1xi32>
    %12 = arith.cmpi slt, %10, %11 : vector<8x1xi32>
    %c0_7 = arith.constant 0 : index
    %c0_8 = arith.constant 0 : index
    %13 = vector.load %arg5[%c0_7, %c0_8] : memref<8x1xi32, #tpu.memory_space<vmem>>, vector<8x1xi32>
    %c1_i32 = arith.constant 1 : i32
    %14 = vector.broadcast %c1_i32 : i32 to vector<8x1xi32>
    %15 = arith.cmpi eq, %13, %14 : vector<8x1xi32>
    %16 = arith.andi %12, %15 : vector<8x1xi1>
    %cst_9 = arith.constant dense<0xFF800000> : vector<8xf32>
    %17 = vector.multi_reduction <maximumf>, %5, %cst_9 [1] : vector<8x128xf32> to vector<8xf32>
    %18 = vector.shape_cast %17 : vector<8xf32> to vector<8x1xf32>
    %19 = vector.broadcast %18 : vector<8x1xf32> to vector<8x128xf32>
    %20 = arith.subf %5, %19 : vector<8x128xf32>
    %21 = math.exp %20 : vector<8x128xf32>
    %cst_10 = arith.constant dense<0.000000e+00> : vector<8xf32>
    %22 = vector.multi_reduction <add>, %21, %cst_10 [1] : vector<8x128xf32> to vector<8xf32>
    %23 = vector.shape_cast %22 : vector<8xf32> to vector<8x1xf32>
    %24 = math.log %23 : vector<8x1xf32>
    %25 = arith.addf %18, %24 : vector<8x1xf32>
    %26 = tpu.iota {dimensions = array<i32: 1>} : vector<8x128xi32>
    %c0_11 = arith.constant 0 : index
    %c0_12 = arith.constant 0 : index
    %27 = vector.load %arg4[%c0_11, %c0_12] : memref<8x1xi32, #tpu.memory_space<vmem>>, vector<8x1xi32>
    %28 = vector.broadcast %27 : vector<8x1xi32> to vector<8x128xi32>
    %29 = arith.cmpi eq, %26, %28 : vector<8x128xi32>
    %cst_13 = arith.constant 0.000000e+00 : f32
    %30 = vector.broadcast %cst_13 : f32 to vector<8x128xf32>
    %31 = arith.select %29, %5, %30 : vector<8x128xi1>, vector<8x128xf32>
    %cst_14 = arith.constant dense<0.000000e+00> : vector<8xf32>
    %32 = vector.multi_reduction <add>, %31, %cst_14 [1] : vector<8x128xf32> to vector<8xf32>
    %33 = vector.shape_cast %32 : vector<8xf32> to vector<8x1xf32>
    %34 = arith.subf %25, %33 : vector<8x1xf32>
    %cst_15 = arith.constant 0.000000e+00 : f32
    %35 = vector.broadcast %cst_15 : f32 to vector<8x1xf32>
    %36 = arith.select %16, %34, %35 : vector<8x1xi1>, vector<8x1xf32>
    %37 = vector.shape_cast %36 : vector<8x1xf32> to vector<1x8x1xf32>
    %cst_16 = arith.constant dense<0.000000e+00> : vector<1xf32>
    %38 = vector.multi_reduction <add>, %37, %cst_16 [1, 2] : vector<1x8x1xf32> to vector<1xf32>
    %39 = vector.shape_cast %38 : vector<1xf32> to vector<1x1x1xf32>
    %40 = vector.extract %39[0, 0, 0] : f32 from vector<1x1x1xf32>
    %41 = vector.broadcast %40 : f32 to vector<1x8x128xf32>
    %c0_17 = arith.constant 0 : index
    %c0_18 = arith.constant 0 : index
    %c0_19 = arith.constant 0 : index
    %42 = vector.load %arg7[%c0_17, %c0_18, %c0_19] : memref<1x8x128xf32, #tpu.memory_space<vmem>>, vector<1x8x128xf32>
    tpu.vector_store %arg7[%c0_17, %c0_18, %c0_19], %41 {strides = array<i32>} : memref<1x8x128xf32, #tpu.memory_space<vmem>>, vector<1x8x128xf32>,
    return
  }
  func.func @transform_0(%arg0: i32) -> (i32, i32) {
    %c0_i32 = arith.constant 0 : i32
    %c0_i32_0 = arith.constant 0 : i32
    return %arg0, %c0_i32 : i32, i32
  }
  func.func @transform_1(%arg0: i32) -> (i32, i32) {
    %c0_i32 = arith.constant 0 : i32
    %c0_i32_0 = arith.constant 0 : i32
    %c0_i32_1 = arith.constant 0 : i32
    return %c0_i32, %c0_i32_0 : i32, i32
  }
  func.func @transform_2(%arg0: i32) -> (i32, i32) {
    %c0_i32 = arith.constant 0 : i32
    %c0_i32_0 = arith.constant 0 : i32
    %c0_i32_1 = arith.constant 0 : i32
    return %c0_i32, %c0_i32_0 : i32, i32
  }
  func.func @transform_3(%arg0: i32) -> (i32, i32) {
    %c0_i32 = arith.constant 0 : i32
    %c0_i32_0 = arith.constant 0 : i32
    return %arg0, %c0_i32 : i32, i32
  }
  func.func @transform_4(%arg0: i32) -> (i32, i32) {
    %c0_i32 = arith.constant 0 : i32
    %c0_i32_0 = arith.constant 0 : i32
    return %arg0, %c0_i32 : i32, i32
  }
  func.func @transform_5(%arg0: i32) -> (i32, i32) {
    %c0_i32 = arith.constant 0 : i32
    %c0_i32_0 = arith.constant 0 : i32
    return %arg0, %c0_i32 : i32, i32
  }
  func.func @transform_6(%arg0: i32) -> (i32, i32, i32) {
    %c0_i32 = arith.constant 0 : i32
    %c0_i32_0 = arith.constant 0 : i32
    %c0_i32_1 = arith.constant 0 : i32
    return %arg0, %c0_i32, %c0_i32_0 : i32, i32, i32
  }
}

</mosaic_0001>

<bundles_post_ra>
// kernel: tpu_custom_call.1
= control target key start
LH: loop header
LB: loop body
LE: loop exit
PB: predicated region body
PF: predicated region fallthrough
CT: control target
= control target key end

     0   :  { %12 = vsyncpa [#allocation3], 0  ;;  %s935_s0 = inlined_call_operand.vmem [shape: bf16[20,32], index: 0, kind: input, shape index: {}]   ;;  %s936_s1 = inlined_call_operand.vmem [shape: bf16[32,128], index: 1, kind: input, shape index: {}]   ;;  %s937_s2 = inlined_call_operand.vmem [shape: f32[1,128], index: 2, kind: input, shape index: {}]   ;;  %s938_s3 = inlined_call_operand.vmem [shape: s32[20,1], index: 3, kind: input, shape index: {}]   ;;  %s939_s4 = inlined_call_operand.vmem [shape: s32[20,1], index: 4, kind: input, shape index: {}]   ;;  %s940_s5 = inlined_call_operand.hbm [shape: f32[20,128], index: 5, kind: output, shape index: {0}]   ;;  %s941_s6 = inlined_call_operand.hbm [shape: f32[3,8,128], index: 6, kind: output, shape index: {1}]  }
   0x1   :  { %14 = vsyncpa [#allocation3 + $0x1], 0 }
   0x2   :  { %15 = vsyncpa [#allocation5], 0 }
   0x3   :  { %17 = vsyncpa [#allocation5 + $0x1], 0  ;;  %s776_s21 = smov 0   ;;  %s778_s22 = smov 0  }
   0x4   :  { %s780_s23 = smov 0   ;;  %s782_s24 = smov 0  }
   0x5 LB: > { %s797_s25 = sadd.s32 4294967295, %s734_s24   ;;  %s553_s26 = sadd.s32 4294967294, %s734_s24   ;;  %s734_s24 = sphi %s782_s24, %s947_s24   ;;  %s730_s23 = sphi %s780_s23, %s946_s23   ;;  %s726_s22 = sphi %s778_s22, %s945_s22   ;;  %s722_s21 = sphi %s776_s21, %s944_s21  }
   0x6   : > { %s801_s27 = sadd.s32 1, %s734_s24   ;;  %s150_s28 = sadd.s32 1, %s730_s23 }
   0x7   : > { %s147_s29 = ssub.s32 %s734_s24, %s801_s27  ;;  %p160_p0 = scmp.ne.s32.totalorder %s730_s23, %s726_s22 }
   0x8   : > { %p148_p1 = scmp.eq.s32.totalorder %s147_s29, 0  ;;  %p161_p2 = scmp.eq.s32.totalorder %s797_s25, 2 }
   0x9   : > { %p166_p3 = scmp.ne.s32.totalorder %s726_s22, %s722_s21  ;;  %p167_p4 = scmp.eq.s32.totalorder %s553_s26, 2 }
   0xa   : > { %s812_s30 = scalar_select %p148_p1, %s730_s23, %s150_s28  }
   0xb   : > { %p814_p5 = por %p161_p2, %p160_p0  ;;  %p818_p6 = por %p167_p4, %p166_p3 }
   0xc   : > { %p556_p7 = scmp.ge.s32.totalorder %s734_s24, 1  ;;  %p238_p8 = scmp.lt.s32.totalorder %s734_s24, 4 }
   0xe   : > { %p239_p9 = pnand %p556_p7, %p238_p8 }
   0xf   : > { %v634_v0 = vld [vmem:[%s936_s1] sm:$0xff] (!%p239_p9)   ;;  %v736_v1 = vmov (!%p239_p9), 0.0   ;;  %v635_v2 = vld [vmem:[%s936_s1 + $0x8] sm:$0xff] (!%p239_p9)   ;;  %vm737_vm0 = vmmov (!%p239_p9), 0   ;;  %p280_p10 = scmp.lt.s32.totalorder (!%p239_p9), %s797_s25, 2  ;;  %vm317_vm1 = vcmask (!%p239_p9), 261120   ;;  %v362_v15 = vlaneseq (!%p239_p9) }
  0x10   : > { %242 = sbr.rel (%p239_p9) target bundleno = 779 (0x30b), region = 40  ;;  %576 = vmatprep.subr.bf16.mxu0 (!%p239_p9), %v736_v1  ;;  %580 = vmatprep.mubr.msk.bf16.mxu0 (!%p239_p9), %vm737_vm0, %v736_v1  ;;  %v738_v4 = vmov (!%p239_p9), 0   ;;  %s839_s18 = sand.u32 (!%p239_p9), 1, %s726_s22   ;;  %v562_v5 = vld [vmem:[%s937_s2] ss:$0 sm:$0xff] (!%p239_p9)  ;;  %vm393_vm6 = vcmask (!%p239_p9), 7168  }
  0x11   : > { %577 = vmatpush3.bf16.msra.mxu0 (!%p239_p9), %v634_v0  ;;  %633 = vset.pattern.permute.xlu0 (!%p239_p9), %v738_v4  ;;  %s557_s19 = sshll.u32 (!%p239_p9), %s839_s18, 3  ;;  %v382_v16 = vand.u32 (!%p239_p9), 127, %v362_v15  ;;  %s566_s12 = sshll.u32 (!%p239_p9), %s797_s25, 3  ;;  %v363_v21 = vshrl.u32 (!%p239_p9), %v362_v15, 7 }
  0x12   : > { %578 = vmatprep.subr.bf16.mxu0 (!%p239_p9), %v736_v1  ;;  %s847_s28 = scalar_lea.vmem (!%p239_p9), [#allocation2], %s557_s19  ;;  %v365_v22 = vstv (!%p239_p9), %s566_s12  ;;  %s569_s16 = sshll.u32 (!%p239_p9), %s797_s25, 7 }
  0x13   : > { %v366_v23 = vadd.s32 (!%p239_p9), %v365_v22, %v363_v21  ;;  %s864_s26 = scalar_lea.hbm (!%p239_p9), %s940_s5, %s569_s16  ;;  %s407_s9 = scalar_lea.sflag (!%p239_p9), [#allocation3], %s839_s18 }
  0x15   : > { %579 = vmatpush3.bf16.msra.mxu0 (!%p239_p9), %v635_v2  ;;  %vm367_vm3 = vcmp.lt.s32.totalorder (!%p239_p9), %v366_v23, 20 }
  0x17   : > { %s832_s13 = scalar_select %p280_p10, %s797_s25, 2 }
  0x19   : > { %s559_s14 = sshll.u32 %s832_s13, 2  ;;  %s560_s29 = sshll.u32 %s832_s13, 3 }
  0x1a   : > { %s283_s17 = scalar_lea.vmem %s935_s0, %s559_s14  ;;  %s287_s11 = scalar_lea.vmem %s938_s3, %s560_s29 }
  0x1b   : > { %v293_v3 = vld [vmem:[%s283_s17] sm:$0xf]  ;;  %s291_s15 = scalar_lea.vmem %s939_s4, %s560_s29  ;;  %s425_s29 = sshll.u32 %s847_s28, 4  ;;  %s426_s29 = int_to_ptr.vmem [resolvable:$true] %s425_s29 }
  0x1c   : > { %581 = vmatmul.mubr.msk.bf16.vlgmr.msra.gmra.mrb[0].mxu0 %vm317_vm1, %v293_v3  ;;  %v383_v11 = vld [vmem:[%s287_s11] sm:$0xff]  ;;  %s640_s10 = scalar_lea.vmem %s426_s29, 128  ;;  %s739_s11 = smov [#allocation2]  }
  0x1d   : > { %v368_v24 = vld [vmem:[%s291_s15] sm:$0xff]  ;;  %p641_p11 = scmp.ne.s32.totalorder %s426_s29, %s640_s10  ;;  %s644_s12 = sshll.u32 %s739_s11, 4  ;;  %s645_s12 = int_to_ptr.vmem [resolvable:$false] %s644_s12 }
  0x1e   : > { %vm369_vm4 = vcmp.eq.s32.totalorder %v368_v24, 1  ;;  %s646_s13 = scalar_lea.vmem %s645_s12, 256  ;;  %p647_p0 = scmp.lt.s32.totalorder %s426_s29, %s645_s12 }
  0x1f   : > { %vm370_vm5 = vmand %vm367_vm3, %vm369_vm4  ;;  %p642_p12 = pnand %p641_p11, %p814_p5  ;;  %p648_p1 = scmp.lt.s32.totalorder %s646_s13, %s640_s10 }
  0x21   : > { %p643_p13 = pneg %p642_p12  ;;  %p649_p2 = por %p648_p1, %p647_p0 }
  0x23   : > { %p650_p3 = pnand %p649_p2, %p643_p13 }
  0xef   : > { %v355_v6 = vpop.f32.mrb[0].mxu0 }
  0xf0   : > { %v356_v7 = vadd.f32 %v562_v5, %v355_v6  ;;  %v582_v8 = vpop.f32.mrb[1].mxu0 }
  0xf1   : > { %v358_v9 = vpop.f32.mrb[2].mxu0 }
  0xf2   : > { %371 = vmax.xlane.f32.xlu0 %v356_v7  ;;  %v583_v10 = vpop.f32.mrb[3].mxu0  ;;  %361 = vst [vmem:[%s847_s28] sm:$0xff] %v356_v7 }
 0x108   : > { %385 = vperm.xlu0 %633, %v383_v11  }
 0x17f   : > { %v372_v12 = vpop.xlane.xlu0 %371 }
 0x180   : > { %v373_v13 = vsub.f32 %v356_v7, %v372_v12 }
 0x182   : > { %v374_v14 = vmul.f32 1.442695, %v373_v13 }
 0x184   : > { %636 = vpow2.f32 %v374_v14 }
 0x187   : > { %v386_v17 = vpop.permute.xlu0 %385 }
 0x188   : > { %vm387_vm2 = vcmp.eq.s32.totalorder %v382_v16, %v386_v17 }
 0x189   : > { %v388_v19 = vsel %vm387_vm2, %v356_v7, 0.0 }
 0x18e   : > { %v637_v18 = vpop.eup %636 }
 0x18f   : > { %376 = vadd.xlane.f32.xlu1 %v637_v18 }
 0x193   : > { %389 = vadd.xlane.f32.xlu1 %v388_v19 }
 0x21c   : > { %v377_v20 = vpop.xlane.xlu1 %376 }
 0x21d   : > { %638 = vlog2.f32 %v377_v20 }
 0x220   : > { %v390_v28 = vpop.xlane.xlu1 %389 }
 0x227   : > { %v639_v25 = vpop.eup %638 }
 0x228   : > { %v379_v26 = vmul.f32 0.6931472, %v639_v25 }
 0x22a   : > { %v380_v27 = vadd.f32 %v379_v26, %v372_v12 }
 0x22c   : > { %v391_v29 = vsub.f32 %v380_v27, %v390_v28 }
 0x22e   : > { %v392_v30 = vsel %vm370_vm5, %v391_v29, 0.0 }
 0x22f   : > { %v394_v31 = vsel %vm393_vm6, %v392_v30, 0.0 }
 0x230   : > { %395 = vadd.xlane.f32.xlu1 %v394_v31 }
 0x231   : > { %653 = shalt.err (!%p650_p3)
}
 0x232   : > { %s654_s28 = scalar_lea.hbm %s864_s26, 128  ;;  %s658_s17 = scalar_lea.hbm %s940_s5, 384 }
 0x233   : > { %p655_p4 = scmp.ne.s32.totalorder %s864_s26, %s654_s28  ;;  %p659_p9 = scmp.lt.u32.totalorder %s864_s26, %s940_s5 }
 0x234   : > { %p660_p10 = scmp.lt.u32.totalorder %s658_s17, %s654_s28  ;;  %p662_p12 = scmp.lt.u32.totalorder %s654_s28, %s864_s26 }
 0x235   : > { %p656_p7 = pnand %p655_p4, %p814_p5 }
 0x236   : > { %p661_p11 = por %p660_p10, %p659_p9 }
 0x237   : > { %p657_p8 = pneg %p656_p7 }
 0x238   : > { %p663_p13 = por %p662_p12, %p661_p11 }
 0x23a   : > { %p664_p0 = pnand %p663_p13, %p657_p8 }
 0x23c   : > { %667 = shalt.err (!%p664_p0)
}
 0x23d   : > { %586 = dma.vmem_to_hbm [thread:$0]  (%p814_p5), %s426_s29, 128, %s864_s26, %s407_s9  }
 0x23e   : > { %s279_s10 = scalar_lea.vmem [#allocation4], %s557_s19  ;;  %s894_s9 = scalar_lea.hbm %s941_s6, %s569_s16 }
 0x23f   : > { %s438_s12 = sshll.u32 %s279_s10, 4  ;;  %s412_s28 = scalar_lea.sflag [#allocation5], %s839_s18  ;;  %s887_s12 = int_to_ptr.vmem [resolvable:$true] %s438_s12 }
 0x240   : > { %s668_s14 = scalar_lea.vmem %s887_s12, 128  ;;  %s740_s19 = smov [#allocation4]  }
 0x241   : > { %p669_p1 = scmp.ne.s32.totalorder %s887_s12, %s668_s14  ;;  %s672_s15 = sshll.u32 %s740_s19, 4  ;;  %s673_s15 = int_to_ptr.vmem [resolvable:$false] %s672_s15 }
 0x242   : > { %s674_s17 = scalar_lea.vmem %s673_s15, 256  ;;  %p675_p4 = scmp.lt.s32.totalorder %s887_s12, %s673_s15 }
 0x243   : > { %p670_p2 = pnand %p669_p1, %p814_p5  ;;  %p676_p7 = scmp.lt.s32.totalorder %s674_s17, %s668_s14 }
 0x245   : > { %p671_p3 = pneg %p670_p2  ;;  %p677_p8 = por %p676_p7, %p675_p4 }
 0x247   : > { %p678_p9 = pnand %p677_p8, %p671_p3 }
 0x2bd   : > { %v396_v32 = vpop.xlane.xlu1 %395 }
 0x2be   : > { %v397_v33 = vrot.slane %v396_v32, 4 }
 0x2c0   : > { %v398_v34 = vadd.f32 %v397_v33, %v396_v32 }
 0x2c2   : > { %v399_v35 = vrot.slane %v398_v34, 2 }
 0x2c4   : > { %v400_v36 = vadd.f32 %v399_v35, %v398_v34 }
 0x2c6   : > { %v401_v37 = vrot.slane %v400_v36, 1 }
 0x2c8   : > { %v402_v38 = vadd.f32 %v401_v37, %v400_v36 }
 0x2ca   : > { %584 = vpush %v402_v38 }
 0x2fb   : > { %s585_s13 = spop %584 }
 0x2fc   : > { %v404_v39 = vstv %s585_s13 }
 0x2fd   : > { %405 = vst [vmem:[%s279_s10] sm:$0xff] %v404_v39 }
 0x2fe   : > { %681 = shalt.err (!%p678_p9)
}
 0x2ff   : > { %s682_s25 = scalar_lea.hbm %s894_s9, 128  ;;  %s686_s20 = scalar_lea.hbm %s941_s6, 384 }
 0x300   : > { %p683_p10 = scmp.ne.s32.totalorder %s894_s9, %s682_s25  ;;  %p687_p13 = scmp.lt.u32.totalorder %s894_s9, %s941_s6 }
 0x301   : > { %p688_p0 = scmp.lt.u32.totalorder %s686_s20, %s682_s25  ;;  %p690_p2 = scmp.lt.u32.totalorder %s682_s25, %s894_s9 }
 0x302   : > { %p684_p11 = pnand %p683_p10, %p814_p5 }
 0x303   : > { %p689_p1 = por %p688_p0, %p687_p13 }
 0x304   : > { %p685_p12 = pneg %p684_p11 }
 0x305   : > { %p691_p3 = por %p690_p2, %p689_p1 }
 0x307   : > { %p692_p4 = pnand %p691_p3, %p685_p12 }
 0x309   : > { %695 = shalt.err (!%p692_p4)
}
 0x30a   : > { %587 = dma.vmem_to_hbm [thread:$0]  (%p814_p5), %s887_s12, 128, %s894_s9, %s412_s28  }
 0x30b PF: > { %p597_p7 = scmp.ge.s32.totalorder %s734_s24, 2  ;;  %s450_s13 = sand.u32 1, %s722_s21  }
 0x30c   : > { %s451_s26 = scalar_lea.sflag [#allocation3], %s450_s13 }
 0x30d   : > { %p591_p8 = pnand %p597_p7, %p818_p6 }
 0x30f   : > { %713 = dma.done.wait (!%p591_p8), %s451_s26, 128  }
 0x310   : > { %715 = vsyncadd (!%p591_p8), %s451_s26, 4294967168  ;;  %s460_s29 = scalar_lea.sflag [#allocation5], %s450_s13 }
 0x311   : > { %717 = dma.done.wait (!%p591_p8), %s460_s29, 128  }
 0x312   : > { %719 = vsyncadd (!%p591_p8), %s460_s29, 4294967168  ;;  %p20_p5 = scmp.ge.s32.totalorder %s801_s27, 5   ;;  %s944_s21 = smov %s726_s22 }
 0x313   : > { %s945_s22 = smov %s730_s23  ;;  %s946_s23 = smov %s812_s30 }
 0x314   : > { %s947_s24 = smov %s801_s27  ;;  %22 = sbr.rel (!%p20_p5) target bundleno = 5 (0x5), region = 98 }
 0x31b   :  { %465 = vsyncpa [#allocation3], 1 }
 0x31c   :  { %467 = vsyncpa [#allocation3 + $0x1], 1 }
 0x31d   :  { %468 = vsyncpa [#allocation5], 1 }
 0x31e   :  { %470 = vsyncpa [#allocation5 + $0x1], 1 }

</bundles_post_ra>
